<compile_context>
chip_gen: v5e
topology: v5e:2x2
jax: 0.10.0
libtpu: 0.0.40
codegen_flags: <defaults>
</compile_context>

<pallas_src>
import jax
import jax.numpy as jnp
from jax.experimental import pallas as pl
from jax.experimental.pallas import tpu as pltpu


_IN_FEATURES = 242
_OUT_FEATURES = 20
_HID = 128  # 32-wide hidden layers are zero-padded to 128 lanes
_LAYER_SIZES = [(242, 128), (128, 128), (128, 32), (32, 32), (32, 32), (32, 20)]


def _round_up(n, m):
    return (n + m - 1) // m * m


def _mlp_kernel(x_ref,
                w1_ref, b1_ref,
                w2_ref, b2_ref,
                w21_ref, b21_ref,
                w22_ref, b22_ref,
                w23_ref, b23_ref,
                w3_ref, b3_ref,
                o_ref):
    """One batch tile of the full MLP.

    MXU operands are bf16 with f32 accumulation; bias-add / ReLU stay in f32
    (v5e-safe). x arrives as f32 and is cast to bf16 in-kernel.
    """
    h = x_ref[...].astype(jnp.bfloat16)               # (tile_b, 242) bf16

    def dense_relu(h_bf16, w_ref, b_ref):
        y = jnp.dot(h_bf16, w_ref[...], preferred_element_type=jnp.float32)
        y = jnp.maximum(y + b_ref[...], 0.0)          # f32 bias + ReLU
        return y.astype(jnp.bfloat16)                 # bf16 operand for next MXU pass

    h = dense_relu(h, w1_ref, b1_ref)                 # (tile_b, 128)
    h = dense_relu(h, w2_ref, b2_ref)                 # (tile_b, 128)
    h = dense_relu(h, w21_ref, b21_ref)               # (tile_b, 128)  (32 real + 96 zero)
    h = dense_relu(h, w22_ref, b22_ref)               # (tile_b, 128)
    h = dense_relu(h, w23_ref, b23_ref)               # (tile_b, 128)
    # fc3 -- no activation; compact f32 store (20 valid lanes only).
    o_ref[...] = (jnp.dot(h, w3_ref[...], preferred_element_type=jnp.float32)
                  + b3_ref[...])


def prepare_params(params):
    """One-time weight prep: bf16 cast + zero-pad of the 32-wide hidden layers.

    params: 6 tuples (W, b); W is (in, out) f32, b is (1, out) f32.
    Returns a tuple of (W_bf16, b_f32) ready to feed to nn_small_forward.
    The zero padding is exact (padded activations are exactly 0 and padded weight
    rows are 0), so results are bit-identical to the unpadded computation.
    """
    (w1, b1), (w2, b2), (w21, b21), (w22, b22), (w23, b23), (w3, b3) = params

    def pad2(a, rows, cols):
        return jnp.pad(a, ((0, rows - a.shape[0]), (0, cols - a.shape[1])))

    weights = [
        w1,                                   # (242, 128)
        w2,                                   # (128, 128)
        pad2(w21, 128, _HID),                 # (128, 32) -> (128, 128)
        pad2(w22, _HID, _HID),                # (32, 32)  -> (128, 128)
        pad2(w23, _HID, _HID),                # (32, 32)  -> (128, 128)
        pad2(w3, _HID, _OUT_FEATURES),        # (32, 20)  -> (128, 20)
    ]
    biases = [
        b1, b2,
        pad2(b21, 1, _HID), pad2(b22, 1, _HID), pad2(b23, 1, _HID),
        b3,
    ]
    weights = [jnp.asarray(w, jnp.bfloat16) for w in weights]
    biases = [jnp.asarray(b, jnp.float32) for b in biases]
    return tuple(zip(weights, biases))


def nn_small_forward(x, prepared_params, *, tile_b=1024):
    """x: (B, 242) float32. prepared_params: output of prepare_params().

    Returns (B, 20) float32 matching the PyTorch module's forward().
    """
    B = x.shape[0]
    assert x.shape[1] == _IN_FEATURES
    x = x.astype(jnp.float32)

    # Pad the batch only to a multiple of 8 rows; partial last tiles are masked.
    b8 = _round_up(max(B, 1), 8)
    if b8 != B:
        x = jnp.pad(x, ((0, b8 - B), (0, 0)))

    tile_b = min(_round_up(max(tile_b, 8), 8), b8)
    grid = (pl.cdiv(b8, tile_b),)

    flat = [x]
    # Last dim (242) equals the full array dim, so the (8,128) rule is satisfied
    # without padding the feature axis.
    in_specs = [pl.BlockSpec((tile_b, _IN_FEATURES), lambda i: (i, 0))]
    for w, b in prepared_params:
        flat += [w, b]
        # Constant block index -> weights/biases stay VMEM-resident across tiles.
        in_specs += [pl.BlockSpec(w.shape, lambda i: (0, 0)),
                     pl.BlockSpec(b.shape, lambda i: (0, 0))]

    out = pl.pallas_call(
        _mlp_kernel,
        grid=grid,
        in_specs=in_specs,
        # Compact (tile_b, 20) output: last block dim == full array dim.
        out_specs=pl.BlockSpec((tile_b, _OUT_FEATURES), lambda i: (i, 0)),
        out_shape=jax.ShapeDtypeStruct((b8, _OUT_FEATURES), jnp.float32),
        compiler_params=pltpu.CompilerParams(
            dimension_semantics=("parallel",)),       # v7x: shard tiles over both TCs
    )(*flat)

    return out if b8 == B else out[:B]


def init_params(key):
    """Deterministic init mimicking nn.Linear's U(-1/sqrt(fan_in), +1/sqrt(fan_in))."""
    params = []
    for (fan_in, fan_out) in _LAYER_SIZES:
        key, kw, kb = jax.random.split(key, 3)
        bound = 1.0 / (fan_in ** 0.5)
        w = jax.random.uniform(kw, (fan_in, fan_out), jnp.float32, -bound, bound)
        b = jax.random.uniform(kb, (1, fan_out), jnp.float32, -bound, bound)
        params.append((w, b))
    return params


def reference_forward(x, params, *, matmul_dtype=jnp.float32):
    """Pure-JAX reference. matmul_dtype=bfloat16 mirrors the kernel's MXU precision."""
    h = x
    for i, (w, b) in enumerate(params):
        h = jnp.dot(h.astype(matmul_dtype), w.astype(matmul_dtype),
                    preferred_element_type=jnp.float32) + b
        if i < len(params) - 1:
            h = jnp.maximum(h, 0.0)
    return h


def _check(out, x, params):
    assert out.shape == (x.shape[0], _OUT_FEATURES)
    ref_bf16 = reference_forward(x, params, matmul_dtype=jnp.bfloat16)
    ref_f32 = reference_forward(x, params, matmul_dtype=jnp.float32)
    assert jnp.allclose(out, ref_bf16, atol=1e-2, rtol=1e-2), "mismatch vs bf16 reference"
    assert jnp.allclose(out, ref_f32, atol=6e-2, rtol=6e-2), "mismatch vs f32 reference"


# TODO(synk): self.soft = nn.LogSoftmax(dim=0) is declared in the module but never
# applied in forward(), so it is intentionally not implemented here either.

if __name__ == "__main__":
    key = jax.random.PRNGKey(0)
    kx, kp = jax.random.split(key)
    params = init_params(kp)
    prepared = prepare_params(params)   # one-time weight prep (cached across calls)

    # Small shape consistent with the module: batch=8, features=242 (single tile).
    B = 8
    x = jax.random.normal(kx, (B, _IN_FEATURES), jnp.float32)
    out = jax.block_until_ready(nn_small_forward(x, prepared))
    _check(out, x, params)

    # Exercise the batch grid: batch not a multiple of 8, multiple tiles, and a
    # partial (masked) last tile via the cdiv grid.
    B2 = 20
    x2 = jax.random.normal(jax.random.PRNGKey(1), (B2, _IN_FEATURES), jnp.float32)
    out2 = jax.block_until_ready(nn_small_forward(x2, prepared, tile_b=16))
    _check(out2, x2, params)

    print("KERNEL_OK")
</pallas_src>

<mosaic_0001>
module attributes {stable_mosaic.version = 11 : i64} {
  func.func @_mlp_kernel(%arg0: i32, %arg1: memref<8x242xf32, #tpu.memory_space<vmem>>, %arg2: memref<242x128xbf16, #tpu.memory_space<vmem>>, %arg3: memref<1x128xf32, #tpu.memory_space<vmem>>, %arg4: memref<128x128xbf16, #tpu.memory_space<vmem>>, %arg5: memref<1x128xf32, #tpu.memory_space<vmem>>, %arg6: memref<128x128xbf16, #tpu.memory_space<vmem>>, %arg7: memref<1x128xf32, #tpu.memory_space<vmem>>, %arg8: memref<128x128xbf16, #tpu.memory_space<vmem>>, %arg9: memref<1x128xf32, #tpu.memory_space<vmem>>, %arg10: memref<128x128xbf16, #tpu.memory_space<vmem>>, %arg11: memref<1x128xf32, #tpu.memory_space<vmem>>, %arg12: memref<128x20xbf16, #tpu.memory_space<vmem>>, %arg13: memref<1x20xf32, #tpu.memory_space<vmem>>, %arg14: memref<8x20xf32, #tpu.memory_space<vmem>>) attributes {dimension_semantics = [#tpu.dimension_semantics<parallel>], iteration_bounds = array<i64: 1>, scalar_prefetch = 0 : i64, scratch_operands = 0 : i64, tpu.core_type = #tpu.core_type<tc>, window_params = [{transform_indices = @transform_0, window_bounds = array<i64: 8, 242>}, {pipeline_mode = #tpu.pipeline_mode<synchronous>, transform_indices = @transform_1, window_bounds = array<i64: 242, 128>}, {pipeline_mode = #tpu.pipeline_mode<synchronous>, transform_indices = @transform_2, window_bounds = array<i64: 1, 128>}, {pipeline_mode = #tpu.pipeline_mode<synchronous>, transform_indices = @transform_3, window_bounds = array<i64: 128, 128>}, {pipeline_mode = #tpu.pipeline_mode<synchronous>, transform_indices = @transform_4, window_bounds = array<i64: 1, 128>}, {pipeline_mode = #tpu.pipeline_mode<synchronous>, transform_indices = @transform_5, window_bounds = array<i64: 128, 128>}, {pipeline_mode = #tpu.pipeline_mode<synchronous>, transform_indices = @transform_6, window_bounds = array<i64: 1, 128>}, {pipeline_mode = #tpu.pipeline_mode<synchronous>, transform_indices = @transform_7, window_bounds = array<i64: 128, 128>}, {pipeline_mode = #tpu.pipeline_mode<synchronous>, transform_indices = @transform_8, window_bounds = array<i64: 1, 128>}, {pipeline_mode = #tpu.pipeline_mode<synchronous>, transform_indices = @transform_9, window_bounds = array<i64: 128, 128>}, {pipeline_mode = #tpu.pipeline_mode<synchronous>, transform_indices = @transform_10, window_bounds = array<i64: 1, 128>}, {pipeline_mode = #tpu.pipeline_mode<synchronous>, transform_indices = @transform_11, window_bounds = array<i64: 128, 20>}, {pipeline_mode = #tpu.pipeline_mode<synchronous>, transform_indices = @transform_12, window_bounds = array<i64: 1, 20>}, {transform_indices = @transform_13, window_bounds = array<i64: 8, 20>}]} {
    %c0 = arith.constant 0 : index
    %c0_0 = arith.constant 0 : index
    %0 = vector.load %arg1[%c0, %c0_0] : memref<8x242xf32, #tpu.memory_space<vmem>>, vector<8x242xf32>
    %1 = arith.truncf %0 : vector<8x242xf32> to vector<8x242xbf16>
    %c0_1 = arith.constant 0 : index
    %c0_2 = arith.constant 0 : index
    %2 = vector.load %arg2[%c0_1, %c0_2] : memref<242x128xbf16, #tpu.memory_space<vmem>>, vector<242x128xbf16>
    %cst = arith.constant dense<0.000000e+00> : vector<8x128xf32>
    %3 = tpu.matmul %1, %2, %cst {dimension_numbers = #tpu.dot_dimension_numbers<[1], [0], [0], [1], [0, 0, 1, 1], [], []>} : vector<8x242xbf16>, vector<242x128xbf16>, vector<8x128xf32> -> vector<8x128xf32>
    %c0_3 = arith.constant 0 : index
    %c0_4 = arith.constant 0 : index
    %4 = vector.load %arg3[%c0_3, %c0_4] : memref<1x128xf32, #tpu.memory_space<vmem>>, vector<1x128xf32>
    %5 = vector.broadcast %4 : vector<1x128xf32> to vector<8x128xf32>
    %6 = arith.addf %3, %5 : vector<8x128xf32>
    %cst_5 = arith.constant 0.000000e+00 : f32
    %7 = vector.broadcast %cst_5 : f32 to vector<8x128xf32>
    %8 = arith.maximumf %6, %7 : vector<8x128xf32>
    %9 = arith.truncf %8 : vector<8x128xf32> to vector<8x128xbf16>
    %c0_6 = arith.constant 0 : index
    %c0_7 = arith.constant 0 : index
    %10 = vector.load %arg4[%c0_6, %c0_7] : memref<128x128xbf16, #tpu.memory_space<vmem>>, vector<128x128xbf16>
    %cst_8 = arith.constant dense<0.000000e+00> : vector<8x128xf32>
    %11 = tpu.matmul %9, %10, %cst_8 {dimension_numbers = #tpu.dot_dimension_numbers<[1], [0], [0], [1], [0, 0, 1, 1], [], []>} : vector<8x128xbf16>, vector<128x128xbf16>, vector<8x128xf32> -> vector<8x128xf32>
    %c0_9 = arith.constant 0 : index
    %c0_10 = arith.constant 0 : index
    %12 = vector.load %arg5[%c0_9, %c0_10] : memref<1x128xf32, #tpu.memory_space<vmem>>, vector<1x128xf32>
    %13 = vector.broadcast %12 : vector<1x128xf32> to vector<8x128xf32>
    %14 = arith.addf %11, %13 : vector<8x128xf32>
    %cst_11 = arith.constant 0.000000e+00 : f32
    %15 = vector.broadcast %cst_11 : f32 to vector<8x128xf32>
    %16 = arith.maximumf %14, %15 : vector<8x128xf32>
    %17 = arith.truncf %16 : vector<8x128xf32> to vector<8x128xbf16>
    %c0_12 = arith.constant 0 : index
    %c0_13 = arith.constant 0 : index
    %18 = vector.load %arg6[%c0_12, %c0_13] : memref<128x128xbf16, #tpu.memory_space<vmem>>, vector<128x128xbf16>
    %cst_14 = arith.constant dense<0.000000e+00> : vector<8x128xf32>
    %19 = tpu.matmul %17, %18, %cst_14 {dimension_numbers = #tpu.dot_dimension_numbers<[1], [0], [0], [1], [0, 0, 1, 1], [], []>} : vector<8x128xbf16>, vector<128x128xbf16>, vector<8x128xf32> -> vector<8x128xf32>
    %c0_15 = arith.constant 0 : index
    %c0_16 = arith.constant 0 : index
    %20 = vector.load %arg7[%c0_15, %c0_16] : memref<1x128xf32, #tpu.memory_space<vmem>>, vector<1x128xf32>
    %21 = vector.broadcast %20 : vector<1x128xf32> to vector<8x128xf32>
    %22 = arith.addf %19, %21 : vector<8x128xf32>
    %cst_17 = arith.constant 0.000000e+00 : f32
    %23 = vector.broadcast %cst_17 : f32 to vector<8x128xf32>
    %24 = arith.maximumf %22, %23 : vector<8x128xf32>
    %25 = arith.truncf %24 : vector<8x128xf32> to vector<8x128xbf16>
    %c0_18 = arith.constant 0 : index
    %c0_19 = arith.constant 0 : index
    %26 = vector.load %arg8[%c0_18, %c0_19] : memref<128x128xbf16, #tpu.memory_space<vmem>>, vector<128x128xbf16>
    %cst_20 = arith.constant dense<0.000000e+00> : vector<8x128xf32>
    %27 = tpu.matmul %25, %26, %cst_20 {dimension_numbers = #tpu.dot_dimension_numbers<[1], [0], [0], [1], [0, 0, 1, 1], [], []>} : vector<8x128xbf16>, vector<128x128xbf16>, vector<8x128xf32> -> vector<8x128xf32>
    %c0_21 = arith.constant 0 : index
    %c0_22 = arith.constant 0 : index
    %28 = vector.load %arg9[%c0_21, %c0_22] : memref<1x128xf32, #tpu.memory_space<vmem>>, vector<1x128xf32>
    %29 = vector.broadcast %28 : vector<1x128xf32> to vector<8x128xf32>
    %30 = arith.addf %27, %29 : vector<8x128xf32>
    %cst_23 = arith.constant 0.000000e+00 : f32
    %31 = vector.broadcast %cst_23 : f32 to vector<8x128xf32>
    %32 = arith.maximumf %30, %31 : vector<8x128xf32>
    %33 = arith.truncf %32 : vector<8x128xf32> to vector<8x128xbf16>
    %c0_24 = arith.constant 0 : index
    %c0_25 = arith.constant 0 : index
    %34 = vector.load %arg10[%c0_24, %c0_25] : memref<128x128xbf16, #tpu.memory_space<vmem>>, vector<128x128xbf16>
    %cst_26 = arith.constant dense<0.000000e+00> : vector<8x128xf32>
    %35 = tpu.matmul %33, %34, %cst_26 {dimension_numbers = #tpu.dot_dimension_numbers<[1], [0], [0], [1], [0, 0, 1, 1], [], []>} : vector<8x128xbf16>, vector<128x128xbf16>, vector<8x128xf32> -> vector<8x128xf32>
    %c0_27 = arith.constant 0 : index
    %c0_28 = arith.constant 0 : index
    %36 = vector.load %arg11[%c0_27, %c0_28] : memref<1x128xf32, #tpu.memory_space<vmem>>, vector<1x128xf32>
    %37 = vector.broadcast %36 : vector<1x128xf32> to vector<8x128xf32>
    %38 = arith.addf %35, %37 : vector<8x128xf32>
    %cst_29 = arith.constant 0.000000e+00 : f32
    %39 = vector.broadcast %cst_29 : f32 to vector<8x128xf32>
    %40 = arith.maximumf %38, %39 : vector<8x128xf32>
    %41 = arith.truncf %40 : vector<8x128xf32> to vector<8x128xbf16>
    %c0_30 = arith.constant 0 : index
    %c0_31 = arith.constant 0 : index
    %42 = vector.load %arg12[%c0_30, %c0_31] : memref<128x20xbf16, #tpu.memory_space<vmem>>, vector<128x20xbf16>
    %cst_32 = arith.constant dense<0.000000e+00> : vector<8x20xf32>
    %43 = tpu.matmul %41, %42, %cst_32 {dimension_numbers = #tpu.dot_dimension_numbers<[1], [0], [0], [1], [0, 0, 1, 1], [], []>} : vector<8x128xbf16>, vector<128x20xbf16>, vector<8x20xf32> -> vector<8x20xf32>
    %c0_33 = arith.constant 0 : index
    %c0_34 = arith.constant 0 : index
    %44 = vector.load %arg13[%c0_33, %c0_34] : memref<1x20xf32, #tpu.memory_space<vmem>>, vector<1x20xf32>
    %45 = vector.broadcast %44 : vector<1x20xf32> to vector<8x20xf32>
    %46 = arith.addf %43, %45 : vector<8x20xf32>
    %c0_35 = arith.constant 0 : index
    %c0_36 = arith.constant 0 : index
    %47 = vector.load %arg14[%c0_35, %c0_36] : memref<8x20xf32, #tpu.memory_space<vmem>>, vector<8x20xf32>
    tpu.vector_store %arg14[%c0_35, %c0_36], %46 {strides = array<i32>} : memref<8x20xf32, #tpu.memory_space<vmem>>, vector<8x20xf32>,
    return
  }
  func.func @transform_0(%arg0: i32) -> (i32, i32) {
    %c0_i32 = arith.constant 0 : i32
    %c0_i32_0 = arith.constant 0 : i32
    return %arg0, %c0_i32 : i32, i32
  }
  func.func @transform_1(%arg0: i32) -> (i32, i32) {
    %c0_i32 = arith.constant 0 : i32
    %c0_i32_0 = arith.constant 0 : i32
    %c0_i32_1 = arith.constant 0 : i32
    return %c0_i32, %c0_i32_0 : i32, i32
  }
  func.func @transform_2(%arg0: i32) -> (i32, i32) {
    %c0_i32 = arith.constant 0 : i32
    %c0_i32_0 = arith.constant 0 : i32
    %c0_i32_1 = arith.constant 0 : i32
    return %c0_i32, %c0_i32_0 : i32, i32
  }
  func.func @transform_3(%arg0: i32) -> (i32, i32) {
    %c0_i32 = arith.constant 0 : i32
    %c0_i32_0 = arith.constant 0 : i32
    %c0_i32_1 = arith.constant 0 : i32
    return %c0_i32, %c0_i32_0 : i32, i32
  }
  func.func @transform_4(%arg0: i32) -> (i32, i32) {
    %c0_i32 = arith.constant 0 : i32
    %c0_i32_0 = arith.constant 0 : i32
    %c0_i32_1 = arith.constant 0 : i32
    return %c0_i32, %c0_i32_0 : i32, i32
  }
  func.func @transform_5(%arg0: i32) -> (i32, i32) {
    %c0_i32 = arith.constant 0 : i32
    %c0_i32_0 = arith.constant 0 : i32
    %c0_i32_1 = arith.constant 0 : i32
    return %c0_i32, %c0_i32_0 : i32, i32
  }
  func.func @transform_6(%arg0: i32) -> (i32, i32) {
    %c0_i32 = arith.constant 0 : i32
    %c0_i32_0 = arith.constant 0 : i32
    %c0_i32_1 = arith.constant 0 : i32
    return %c0_i32, %c0_i32_0 : i32, i32
  }
  func.func @transform_7(%arg0: i32) -> (i32, i32) {
    %c0_i32 = arith.constant 0 : i32
    %c0_i32_0 = arith.constant 0 : i32
    %c0_i32_1 = arith.constant 0 : i32
    return %c0_i32, %c0_i32_0 : i32, i32
  }
  func.func @transform_8(%arg0: i32) -> (i32, i32) {
    %c0_i32 = arith.constant 0 : i32
    %c0_i32_0 = arith.constant 0 : i32
    %c0_i32_1 = arith.constant 0 : i32
    return %c0_i32, %c0_i32_0 : i32, i32
  }
  func.func @transform_9(%arg0: i32) -> (i32, i32) {
    %c0_i32 = arith.constant 0 : i32
    %c0_i32_0 = arith.constant 0 : i32
    %c0_i32_1 = arith.constant 0 : i32
    return %c0_i32, %c0_i32_0 : i32, i32
  }
  func.func @transform_10(%arg0: i32) -> (i32, i32) {
    %c0_i32 = arith.constant 0 : i32
    %c0_i32_0 = arith.constant 0 : i32
    %c0_i32_1 = arith.constant 0 : i32
    return %c0_i32, %c0_i32_0 : i32, i32
  }
  func.func @transform_11(%arg0: i32) -> (i32, i32) {
    %c0_i32 = arith.constant 0 : i32
    %c0_i32_0 = arith.constant 0 : i32
    %c0_i32_1 = arith.constant 0 : i32
    return %c0_i32, %c0_i32_0 : i32, i32
  }
  func.func @transform_12(%arg0: i32) -> (i32, i32) {
    %c0_i32 = arith.constant 0 : i32
    %c0_i32_0 = arith.constant 0 : i32
    %c0_i32_1 = arith.constant 0 : i32
    return %c0_i32, %c0_i32_0 : i32, i32
  }
  func.func @transform_13(%arg0: i32) -> (i32, i32) {
    %c0_i32 = arith.constant 0 : i32
    %c0_i32_0 = arith.constant 0 : i32
    return %arg0, %c0_i32 : i32, i32
  }
}

</mosaic_0001>

<bundles_post_ra>
// kernel: tpu_custom_call.1
= control target key start
LH: loop header
LB: loop body
LE: loop exit
PB: predicated region body
PF: predicated region fallthrough
CT: control target
= control target key end

     0   :  { %18 = vsyncpa [#allocation3], 0  ;;  %s1327_s0 = inlined_call_operand.hbm [shape: f32[8,242], index: 0, kind: input, shape index: {}]   ;;  %s1328_s1 = inlined_call_operand.hbm [shape: bf16[242,128], index: 1, kind: input, shape index: {}]   ;;  %s1329_s2 = inlined_call_operand.vmem [shape: f32[1,128], index: 2, kind: input, shape index: {}]   ;;  %s1330_s3 = inlined_call_operand.vmem [shape: bf16[128,128], index: 3, kind: input, shape index: {}]   ;;  %s1331_s4 = inlined_call_operand.vmem [shape: f32[1,128], index: 4, kind: input, shape index: {}]   ;;  %s1332_s5 = inlined_call_operand.hbm [shape: bf16[128,128], index: 5, kind: input, shape index: {}]   ;;  %s1333_s6 = inlined_call_operand.vmem [shape: f32[1,128], index: 6, kind: input, shape index: {}]   ;;  %s1334_s7 = inlined_call_operand.hbm [shape: bf16[128,128], index: 7, kind: input, shape index: {}]   ;;  %s1335_s8 = inlined_call_operand.vmem [shape: f32[1,128], index: 8, kind: input, shape index: {}]   ;;  %s1336_s9 = inlined_call_operand.hbm [shape: bf16[128,128], index: 9, kind: input, shape index: {}]   ;;  %s1337_s10 = inlined_call_operand.vmem [shape: f32[1,128], index: 10, kind: input, shape index: {}]   ;;  %s1338_s11 = inlined_call_operand.vmem [shape: bf16[128,20], index: 11, kind: input, shape index: {}]   ;;  %s1339_s12 = inlined_call_operand.vmem [shape: f32[1,20], index: 12, kind: input, shape index: {}]   ;;  %s1340_s13 = inlined_call_operand.hbm [shape: f32[8,20], index: 13, kind: output, shape index: {}]  }
   0x1   :  { %19 = vsyncpa [#allocation6], 0 }
   0x2   :  { %20 = vsyncpa [#allocation9], 0  ;;  %s37_s27 = sshll.u32 %s1328_s1, 4  ;;  %s38_s27 = int_to_ptr.hbm [resolvable:$true] %s37_s27 }
   0x3   :  { %21 = vsyncpa [#allocation4], 0  ;;  %s1165_s28 = smov [#allocation5]   ;;  %s71_s15 = sshll.u32 %s1334_s7, 4  ;;  %s72_s15 = int_to_ptr.hbm [resolvable:$true] %s71_s15 }
   0x4   :  { %s39_s29 = sshll.u32 %s1165_s28, 4  ;;  %s1166_s16 = smov 64   ;;  %s40_s29 = int_to_ptr.vmem [resolvable:$true] %s39_s29 }
   0x5   :  { %s1167_s17 = smov 4   ;;  %s1168_s18 = smov [#allocation8]  }
   0x6   :  { %45 = dma.hbm_to_vmem [thread:$0]  %s38_s27, 1984, %s40_s29, [#allocation6], %s1166_s16, %s1166_s16, %s1167_s17  }
   0x7   :  { %s73_s19 = sshll.u32 %s1168_s18, 4  ;;  %s27_s22 = sshll.u32 %s1327_s0, 4  ;;  %s74_s19 = int_to_ptr.vmem [resolvable:$true] %s73_s19  ;;  %s28_s22 = int_to_ptr.hbm [resolvable:$true] %s27_s22 }
   0x8   :  { %79 = dma.hbm_to_vmem [thread:$0]  %s72_s15, 1024, %s74_s19, [#allocation9], %s1166_s16, %s1166_s16, %s1167_s17  }
   0x9   :  { %s56_s24 = sshll.u32 %s1332_s5, 4  ;;  %s1169_s25 = smov [#allocation2]   ;;  %s57_s24 = int_to_ptr.hbm [resolvable:$true] %s56_s24 }
   0xa   :  { %s29_s26 = sshll.u32 %s1169_s25, 4  ;;  %s1170_s7 = smov [#allocation7]   ;;  %s30_s26 = int_to_ptr.vmem [resolvable:$true] %s29_s26 }
   0xb   :  { %32 = dma.hbm_to_vmem [thread:$0]  %s28_s22, 256, %s30_s26, [#allocation3]  }
   0xc   :  { %s58_s27 = sshll.u32 %s1170_s7, 4  ;;  %s86_s30 = sshll.u32 %s1336_s9, 4  ;;  %s59_s27 = int_to_ptr.vmem [resolvable:$true] %s58_s27  ;;  %s87_s30 = int_to_ptr.hbm [resolvable:$true] %s86_s30 }
   0xd   :  { %64 = dma.hbm_to_vmem [thread:$0]  %s57_s24, 1024, %s59_s27, [#allocation6], %s1166_s16, %s1166_s16, %s1167_s17  }
   0xe   :  { %s1171_s0 = smov [#allocation10]  }
   0xf   :  { %s88_s14 = sshll.u32 %s1171_s0, 4  ;;  %s89_s14 = int_to_ptr.vmem [resolvable:$true] %s88_s14 }
  0x10   :  { %94 = dma.hbm_to_vmem [thread:$0]  %s87_s30, 1024, %s89_s14, [#allocation9], %s1166_s16, %s1166_s16, %s1167_s17  }
  0x11   :  { %1157 = dma.done.wait [#allocation3], 256  }
  0x12   :  { %1158 = vsyncadd [#allocation3], 4294967040 }
  0x13   :  { %1159 = dma.done.wait [#allocation6], 3008  }
  0x14   :  { %1160 = vsyncadd [#allocation6], 4294964288 }
  0x15   :  { %1161 = dma.done.wait [#allocation9], 2048  }
  0x16   :  { %1162 = vsyncadd [#allocation9], 4294965248  ;;  %v951_v0 = vld [vmem:[#allocation5 + $0x38] sm:$0xff]  ;;  %vm257_vm0 = vcmask 1040384   ;;  %v950_v3 = vld [vmem:[#allocation5 + $0x30] sm:$0xff]  ;;  %vm253_vm1 = vcmask 932864  }
  0x17   :  { %v155_v1 = vld [vmem:[#allocation5 + $0x78] sm:$0x1]  ;;  %261 = vmatpush.bf16.msra.mxu0 %v951_v0  ;;  %v958_v6 = vld [vmem:[#allocation5 + $0x70] sm:$0xff]  ;;  %v949_v7 = vld [vmem:[#allocation5 + $0x28] sm:$0xff]  ;;  %s1172_s28 = smov [#allocation11]   ;;  %vm702_vm2 = vcmask 162816  }
  0x18   :  { %v221_v2 = vunpack.c.l.b16 %v155_v1  ;;  %v966_v8 = vld [vmem:[%s1330_s3 + $0x38] sm:$0xff]  ;;  %v965_v9 = vld [vmem:[%s1330_s3 + $0x30] sm:$0xff]  ;;  %v964_v12 = vld [vmem:[%s1330_s3 + $0x28] sm:$0xff] }
  0x19   :  { %357 = vmatpush.bf16.msra.mxu2 %v966_v8  ;;  %v957_v10 = vld [vmem:[#allocation5 + $0x68] sm:$0xff]  ;;  %v948_v11 = vld [vmem:[#allocation5 + $0x20] sm:$0xff]  ;;  %v947_v14 = vld [vmem:[#allocation5 + $0x18] sm:$0xff] }
  0x1a   :  { %v237_v4 = vpack.c.b16 %v221_v2, %v221_v2  ;;  %v956_v13 = vld [vmem:[#allocation5 + $0x60] sm:$0xff]  ;;  %v963_v15 = vld [vmem:[%s1330_s3 + $0x20] sm:$0xff]  ;;  %v955_v16 = vld [vmem:[#allocation5 + $0x58] sm:$0xff] }
  0x1b   :  { %262 = vmatpush.bf16.msra.mxu0 %v950_v3  ;;  %v946_v17 = vld [vmem:[#allocation5 + $0x10] sm:$0xff]  ;;  %v962_v18 = vld [vmem:[%s1330_s3 + $0x18] sm:$0xff]  ;;  %v961_v21 = vld [vmem:[%s1330_s3 + $0x10] sm:$0xff] }
  0x1c   :  { %v259_v5 = vsel %vm257_vm0, %v237_v4, 0  ;;  %v954_v19 = vld [vmem:[#allocation5 + $0x50] sm:$0xff]  ;;  %v945_v20 = vld [vmem:[#allocation5 + $0x8] sm:$0xff]  ;;  %v944_v23 = vld [vmem:[#allocation5] sm:$0xff] }
  0x1d   :  { %274 = vmatpush.bf16.msra.mxu1 %v259_v5  ;;  %358 = vmatpush.bf16.msra.mxu2 %v965_v9  ;;  %v953_v22 = vld [vmem:[#allocation5 + $0x48] sm:$0xff]  ;;  %v121_v24 = vld [vmem:[#allocation2] sm:$0xff]  ;;  %v952_v26 = vld [vmem:[#allocation5 + $0x40] sm:$0xff] }
  0x1e   :  { %v123_v25 = vpack.c.bf16 %v121_v24, %v121_v24  ;;  %v122_v27 = vld [vmem:[#allocation2 + $0x8] sm:$0xff]  ;;  %v959_v30 = vld [vmem:[%s1330_s3] sm:$0xff]  ;;  %v972_v33 = vld [vmem:[#allocation7 + $0x28] sm:$0xff] }
  0x1f   :  { %263 = vmatpush.bf16.msra.mxu0 %v949_v7  ;;  %v124_v28 = vpack.c.bf16 %v122_v27, %v122_v27  ;;  %v960_v29 = vld [vmem:[%s1330_s3 + $0x8] sm:$0xff]  ;;  %v973_v32 = vld [vmem:[#allocation7 + $0x30] sm:$0xff]  ;;  %v968_v46 = vld [vmem:[#allocation7 + $0x8] sm:$0xff] }
  0x20   :  { %v974_v31 = vld [vmem:[#allocation7 + $0x38] sm:$0xff]  ;;  %v971_v34 = vld [vmem:[#allocation7 + $0x20] sm:$0xff]  ;;  %v1007_v36 = vld [vmem:[%s1329_s2] ss:$0 sm:$0xff]  ;;  %s709_s2 = sshll.u32 %s1172_s28, 4  ;;  %s710_s2 = int_to_ptr.vmem [resolvable:$true] %s709_s2 }
  0x21   :  { %275 = vmatpush.bf16.msra.mxu1 %v958_v6  ;;  %359 = vmatpush.bf16.msra.mxu2 %v964_v12  ;;  %v970_v35 = vld [vmem:[#allocation7 + $0x18] sm:$0xff]  ;;  %v969_v37 = vld [vmem:[#allocation7 + $0x10] sm:$0xff]  ;;  %v967_v47 = vld [vmem:[#allocation7] sm:$0xff] }
  0x22   :  { %440 = vmatpush.bf16.msra.mxu3 %v974_v31  ;;  %v982_v48 = vld [vmem:[#allocation8 + $0x38] sm:$0xff]  ;;  %v981_v49 = vld [vmem:[#allocation8 + $0x30] sm:$0xff]  ;;  %v980_v50 = vld [vmem:[#allocation8 + $0x28] sm:$0xff] }
  0x23   :  { %264 = vmatpush.bf16.msra.mxu0 %v948_v11  ;;  %v979_v51 = vld [vmem:[#allocation8 + $0x20] sm:$0xff]  ;;  %v978_v52 = vld [vmem:[#allocation8 + $0x18] sm:$0xff]  ;;  %v977_v53 = vld [vmem:[#allocation8 + $0x10] sm:$0xff] }
  0x24   :  { %v1008_v54 = vld [vmem:[%s1331_s4] ss:$0 sm:$0xff]  ;;  %v976_v60 = vld [vmem:[#allocation8 + $0x8] sm:$0xff]  ;;  %v975_v61 = vld [vmem:[#allocation8] sm:$0xff] }
  0x25   :  { %276 = vmatpush.bf16.msra.mxu1 %v957_v10  ;;  %360 = vmatpush.bf16.msra.mxu2 %v963_v15  ;;  %v990_v62 = vld [vmem:[#allocation10 + $0x38] sm:$0xff]  ;;  %v989_v63 = vld [vmem:[#allocation10 + $0x30] sm:$0xff]  ;;  %v988_v0 = vld [vmem:[#allocation10 + $0x28] sm:$0xff] }
  0x26   :  { %441 = vmatpush.bf16.msra.mxu3 %v973_v32  ;;  %v987_v1 = vld [vmem:[#allocation10 + $0x20] sm:$0xff]  ;;  %v986_v2 = vld [vmem:[#allocation10 + $0x18] sm:$0xff]  ;;  %v985_v3 = vld [vmem:[#allocation10 + $0x10] sm:$0xff] }
  0x27   :  { %265 = vmatpush.bf16.msra.mxu0 %v947_v14  ;;  %v1009_v4 = vld [vmem:[%s1333_s6] ss:$0 sm:$0xff]  ;;  %v984_v10 = vld [vmem:[#allocation10 + $0x8] sm:$0xff]  ;;  %v983_v11 = vld [vmem:[#allocation10] sm:$0xff] }
  0x28   :  { %v998_v12 = vld [vmem:[%s1338_s11 + $0x38] sm:$0xff]  ;;  %v996_v14 = vld [vmem:[%s1338_s11 + $0x28] sm:$0xff]  ;;  %v995_v15 = vld [vmem:[%s1338_s11 + $0x20] sm:$0xff] }
  0x29   :  { %277 = vmatpush.bf16.msra.mxu1 %v956_v13  ;;  %361 = vmatpush.bf16.msra.mxu2 %v962_v18  ;;  %v997_v13 = vld [vmem:[%s1338_s11 + $0x30] sm:$0xff]  ;;  %v1010_v18 = vld [vmem:[%s1335_s8] ss:$0 sm:$0xff]  ;;  %v992_v24 = vld [vmem:[%s1338_s11 + $0x8] sm:$0xff] }
  0x2a   :  { %442 = vmatpush.bf16.msra.mxu3 %v972_v33  ;;  %v1012_v32 = vld [vmem:[%s1339_s12] ss:$0 sm:$0xff] }
  0x2b   :  { %266 = vmatpush.bf16.msra.mxu0 %v946_v17  ;;  %v993_v17 = vld [vmem:[%s1338_s11 + $0x10] sm:$0xff] }
  0x2d   :  { %278 = vmatpush.bf16.msra.mxu1 %v955_v16  ;;  %362 = vmatpush.bf16.msra.mxu2 %v961_v21  ;;  %v994_v16 = vld [vmem:[%s1338_s11 + $0x18] sm:$0xff] }
  0x2e   :  { %443 = vmatpush.bf16.msra.mxu3 %v971_v34 }
  0x2f   :  { %267 = vmatpush.bf16.msra.mxu0 %v945_v20 }
  0x31   :  { %279 = vmatpush.bf16.msra.mxu1 %v954_v19  ;;  %363 = vmatpush.bf16.msra.mxu2 %v960_v29 }
  0x32   :  { %444 = vmatpush.bf16.msra.mxu3 %v970_v35 }
  0x33   :  { %268 = vmatpush.bf16.msra.mxu0 %v944_v23 }
  0x35   :  { %280 = vmatpush.bf16.msra.mxu1 %v953_v22  ;;  %364 = vmatpush.bf16.msra.mxu2 %v959_v30 }
  0x36   :  { %269 = vmatmul.bf16.vlgmr.msra.gmra.mxu0 %v123_v25  ;;  %445 = vmatpush.bf16.msra.mxu3 %v969_v37  ;;  %v991_v25 = vld [vmem:[%s1338_s11] sm:$0xff]  ;;  %s711_s11 = sshll.u32 %s1340_s13, 4  ;;  %s712_s11 = int_to_ptr.hbm [resolvable:$true] %s711_s11 }
  0x37   :  { %523 = vmatpush.bf16.msrb.mxu0 %v982_v48 }
  0x39   :  { %281 = vmatpush.bf16.msra.mxu1 %v952_v26  ;;  %689 = vmatpush.bf16.msrb.mxu2 %v998_v12  ;;  %v1011_v26 = vld [vmem:[%s1337_s10] ss:$0 sm:$0xff] }
  0x3a   :  { %446 = vmatpush.bf16.msra.mxu3 %v968_v46 }
  0x3b   :  { %524 = vmatpush.bf16.msrb.mxu0 %v981_v49 }
  0x3c   :  { %783 = vmatmul.msk.bf16.vlgmr.msra.gmra.mxu1 %vm253_vm1, %v124_v28 }
  0x3d   :  { %606 = vmatpush.bf16.msrb.mxu1 %v990_v62  ;;  %690 = vmatpush.bf16.msrb.mxu2 %v997_v13 }
  0x3e   :  { %447 = vmatpush.bf16.msra.mxu3 %v967_v47 }
  0x3f   :  { %525 = vmatpush.bf16.msrb.mxu0 %v980_v50 }
  0x41   :  { %607 = vmatpush.bf16.msrb.mxu1 %v989_v63  ;;  %691 = vmatpush.bf16.msrb.mxu2 %v996_v14 }
  0x43   :  { %526 = vmatpush.bf16.msrb.mxu0 %v979_v51 }
  0x45   :  { %608 = vmatpush.bf16.msrb.mxu1 %v988_v0  ;;  %692 = vmatpush.bf16.msrb.mxu2 %v995_v15 }
  0x47   :  { %527 = vmatpush.bf16.msrb.mxu0 %v978_v52 }
  0x49   :  { %609 = vmatpush.bf16.msrb.mxu1 %v987_v1  ;;  %693 = vmatpush.bf16.msrb.mxu2 %v994_v16 }
  0x4b   :  { %528 = vmatpush.bf16.msrb.mxu0 %v977_v53 }
  0x4d   :  { %610 = vmatpush.bf16.msrb.mxu1 %v986_v2  ;;  %694 = vmatpush.bf16.msrb.mxu2 %v993_v17 }
  0x4f   :  { %529 = vmatpush.bf16.msrb.mxu0 %v976_v60 }
  0x51   :  { %611 = vmatpush.bf16.msrb.mxu1 %v985_v3  ;;  %695 = vmatpush.bf16.msrb.mxu2 %v992_v24 }
  0x53   :  { %530 = vmatpush.bf16.msrb.mxu0 %v975_v61 }
  0x55   :  { %612 = vmatpush.bf16.msrb.mxu1 %v984_v10  ;;  %696 = vmatpush.bf16.msrb.mxu2 %v991_v25 }
  0x59   :  { %613 = vmatpush.bf16.msrb.mxu1 %v983_v11 }
  0xb3   :  { %v270_v38 = vpop.f32.mrf.mxu0 }
  0xb4   :  { %v271_v39 = vadd.f32 %v1007_v36, %v270_v38 }
  0xb9   :  { %v283_v40 = vpop.f32.mrf.mxu1 }
  0xba   :  { %v284_v41 = vadd.f32 %v283_v40, %v271_v39 }
  0xbb   :  { %v272_v43 = vpop.f32.mrf.mxu0 }
  0xbc   :  { %v287_v42 = vmax.f32 %v284_v41, 0.0 }
  0xbe   :  { %v288_v44 = vpack.c.bf16 %v287_v42, %v287_v42 }
  0xc0   :  { %365 = vmatmul.bf16.vlgmr.msra.gmra.mxu2 %v288_v44 }
  0xc1   :  { %v285_v45 = vpop.f32.mrf.mxu1 }
 0x143   :  { %v366_v55 = vpop.f32.mrf.mxu2 }
 0x144   :  { %v367_v56 = vadd.f32 %v1008_v54, %v366_v55 }
 0x146   :  { %v370_v57 = vmax.f32 %v367_v56, 0.0 }
 0x148   :  { %v371_v58 = vpack.c.bf16 %v370_v57, %v370_v57 }
 0x14a   :  { %448 = vmatmul.bf16.vlgmr.msra.gmra.mxu3 %v371_v58 }
 0x14b   :  { %v368_v59 = vpop.f32.mrf.mxu2 }
 0x1cd   :  { %v449_v5 = vpop.f32.mrf.mxu3 }
 0x1ce   :  { %v450_v6 = vadd.f32 %v1009_v4, %v449_v5 }
 0x1d0   :  { %v453_v7 = vmax.f32 %v450_v6, 0.0 }
 0x1d2   :  { %v454_v8 = vpack.c.bf16 %v453_v7, %v453_v7 }
 0x1d4   :  { %531 = vmatmul.bf16.vlgmr.msrb.gmra.mxu0 %v454_v8 }
 0x1d5   :  { %v451_v9 = vpop.f32.mrf.mxu3 }
 0x251   :  { %v532_v19 = vpop.f32.mrf.mxu0 }
 0x252   :  { %v533_v20 = vadd.f32 %v1010_v18, %v532_v19 }
 0x254   :  { %v536_v21 = vmax.f32 %v533_v20, 0.0 }
 0x256   :  { %v537_v22 = vpack.c.bf16 %v536_v21, %v536_v21 }
 0x258   :  { %614 = vmatmul.bf16.vlgmr.msrb.gmra.mxu1 %v537_v22 }
 0x259   :  { %v534_v23 = vpop.f32.mrf.mxu0 }
 0x2d5   :  { %v615_v27 = vpop.f32.mrf.mxu1 }
 0x2d6   :  { %v616_v28 = vadd.f32 %v1011_v26, %v615_v27 }
 0x2d8   :  { %v619_v29 = vmax.f32 %v616_v28, 0.0 }
 0x2da   :  { %v620_v30 = vpack.c.bf16 %v619_v29, %v619_v29 }
 0x2dc   :  { %697 = vmatmul.bf16.vlgmr.msrb.gmra.mxu2 %v620_v30 }
 0x2dd   :  { %v617_v31 = vpop.f32.mrf.mxu1 }
 0x35f   :  { %v698_v33 = vpop.f32.mrf.mxu2 }
 0x360   :  { %v699_v34 = vadd.f32 %v1012_v32, %v698_v33 }
 0x362   :  { %703 = vst.msk [vmem:[#allocation11] sm:$0xff] %vm702_vm2, %v699_v34 }
 0x363   :  { %714 = dma.vmem_to_hbm [thread:$0]  %s710_s2, 128, %s712_s11, [#allocation4]  }
 0x367   :  { %v700_v35 = vpop.f32.mrf.mxu2 }
 0x368   :  { %1163 = dma.done.wait [#allocation4], 128  }
 0x369   :  { %1164 = vsyncadd [#allocation4], 4294967168 }
 0x36a   :  { %719 = vsyncpa [#allocation3], 1 }
 0x36b   :  { %720 = vsyncpa [#allocation6], 1 }
 0x36c   :  { %721 = vsyncpa [#allocation9], 1 }
 0x36d   :  { %722 = vsyncpa [#allocation4], 1 }

</bundles_post_ra>
